<compile_context>
chip_gen: v5e
topology: v5e:2x2
jax: 0.10.0
libtpu: 0.0.40
codegen_flags: <defaults>
</compile_context>

<pallas_src>
import jax
import jax.numpy as jnp
from jax.experimental import pallas as pl
from jax.experimental.pallas import tpu as pltpu

# Small, concrete shapes consistent with the module's forward.
B, L, D, H = 4, 8, 16, 16  # H = per-direction hidden (config.hidden_size // 2)


def bilstm_fused_kernel(x_ref, win_ref, b_ref, whh_ref, m_ref, out_ref, hn_ref):
    # x_ref:   (L*Bp, 2D)  rows [t*Bp:(t+1)*Bp] hold [x_t | x_{L-1-t}]
    # win_ref: (2D, 8H)    block structure routes x_t -> fwd gate cols, x_{L-1-t} -> bwd cols
    # whh_ref: (2H, 8H)    block-diagonal recurrent weights (fused fwd+bwd)
    # b_ref:   (1, 8H)     combined bias, fused gate layout
    # m_ref:   (L, Bp, 2H) validity mask (fwd half uses time t, bwd half time L-1-t)
    # out_ref: (L, Bp, 2H) fused per-step hiddens; hn_ref: (Bp, 2H)
    L_, B_, H2 = out_ref.shape

    # One lane-dense input projection for all L timesteps and both directions.
    gin = jnp.dot(x_ref[...], win_ref[...],
                  preferred_element_type=jnp.float32) + b_ref[...]          # (L*Bp, 8H)

    whh = whh_ref[...]
    h = jnp.zeros((B_, H2), jnp.float32)   # [h_fwd | h_bwd]
    c = jnp.zeros((B_, H2), jnp.float32)

    # Fully unrolled fused time loop: fwd direction processes t, bwd processes L-1-t.
    for t in range(L_):
        gates = gin[t * B_:(t + 1) * B_, :] + jnp.dot(
            h.astype(whh.dtype), whh, preferred_element_type=jnp.float32)   # (Bp, 8H)
        # Fused gate layout [i | f | o | g], each 2H wide ([fwd, bwd] interleaved):
        # one sigmoid over the first 6H columns + one tanh over the last 2H columns.
        sg = jax.nn.sigmoid(gates[:, 0:3 * H2])
        i_g, f_g, o_g = sg[:, 0:H2], sg[:, H2:2 * H2], sg[:, 2 * H2:3 * H2]
        g_g = jnp.tanh(gates[:, 3 * H2:4 * H2])
        c_new = f_g * c + i_g * g_g
        h_new = o_g * jnp.tanh(c_new)

        valid = m_ref[t] != 0.0                       # (Bp, 2H) bool
        out_ref[t] = jnp.where(valid, h_new, 0.0)     # padded steps -> 0 (no 0*NaN hazard)
        h = jnp.where(valid, h_new, h)
        c = jnp.where(valid, c_new, c)

    hn_ref[...] = h   # fwd half = state at t=len-1; bwd half = state after t=0


def _scatter_gate_cols(mat_ifgo, side, Hh):
    """mat_ifgo: (rows, 4H) columns in PyTorch gate order [i, f, g, o].
    Scatter into (rows, 8H) fused layout [i_f,i_b | f_f,f_b | o_f,o_b | g_f,g_b]."""
    rows = mat_ifgo.shape[0]
    out = jnp.zeros((rows, 8 * Hh), mat_ifgo.dtype)
    dst_block = (0, 1, 3, 2)  # source [i, f, g, o] -> dest blocks [i, f, o, g]
    for src_blk, dst_blk in enumerate(dst_block):
        col = dst_blk * 2 * Hh + side * Hh
        out = out.at[:, col:col + Hh].set(mat_ifgo[:, src_blk * Hh:(src_blk + 1) * Hh])
    return out


def rnn_forward(x, x_len, params, mxu_dtype=jnp.float32):
    """x: (B, L, D) float32, x_len: (B,) int (sorted descending). Returns (output, hn).

    Set mxu_dtype=jnp.bfloat16 on v6e/v7x at production sizes (keeps f32 accumulation
    and f32 state/elementwise math; loosen tolerances accordingly)."""
    Bx, Lx, Dx = x.shape
    Hh = params['w_hh_f'].shape[1]
    H2 = 2 * Hh
    Bp = ((Bx + 7) // 8) * 8              # pad batch to full sublanes

    lens = x_len.astype(jnp.int32)
    lens_p = jnp.zeros((Bp,), jnp.int32).at[:Bx].set(lens)
    x_p = jnp.zeros((Bp, Lx, Dx), jnp.float32).at[:Bx].set(x)

    x_tm = jnp.transpose(x_p, (1, 0, 2))                      # (L, Bp, D) time-major
    x_cat = jnp.concatenate([x_tm, x_tm[::-1]], axis=-1)      # per-step [x_t | x_{L-1-t}]
    x2d = x_cat.reshape(Lx * Bp, 2 * Dx).astype(mxu_dtype)

    # Weights -> fused gate-column layout.
    w_in = jnp.concatenate([
        _scatter_gate_cols(params['w_ih_f'].T, 0, Hh),
        _scatter_gate_cols(params['w_ih_b'].T, 1, Hh)], axis=0).astype(mxu_dtype)   # (2D, 8H)
    w_hh = jnp.concatenate([
        _scatter_gate_cols(params['w_hh_f'].T, 0, Hh),
        _scatter_gate_cols(params['w_hh_b'].T, 1, Hh)], axis=0).astype(mxu_dtype)   # (2H, 8H)
    b = (_scatter_gate_cols((params['b_ih_f'] + params['b_hh_f'])[None, :], 0, Hh)
         + _scatter_gate_cols((params['b_ih_b'] + params['b_hh_b'])[None, :], 1, Hh))  # (1, 8H)

    # Validity mask: fwd half uses time t, bwd half uses time L-1-t (padded rows: lens=0).
    t_idx = jnp.arange(Lx)[:, None]
    vf = (t_idx < lens_p[None, :]).astype(jnp.float32)        # (L, Bp)
    vb = ((Lx - 1 - t_idx) < lens_p[None, :]).astype(jnp.float32)
    m = jnp.concatenate([jnp.broadcast_to(vf[:, :, None], (Lx, Bp, Hh)),
                         jnp.broadcast_to(vb[:, :, None], (Lx, Bp, Hh))], axis=-1)

    vmem = pl.BlockSpec(memory_space=pltpu.MemorySpace.VMEM)
    out_k, hn_k = pl.pallas_call(
        bilstm_fused_kernel,
        out_shape=(jax.ShapeDtypeStruct((Lx, Bp, H2), jnp.float32),
                   jax.ShapeDtypeStruct((Bp, H2), jnp.float32)),
        in_specs=[vmem] * 5,
        out_specs=(vmem, vmem),
    )(x2d, w_in, b, w_hh, m)

    # Bwd half stored at loop index t corresponds to time L-1-t -> flip once here.
    out_f = out_k[:, :Bx, :Hh]                                # (L, B, H)
    out_b = out_k[::-1, :Bx, Hh:]                             # (L, B, H)
    output = jnp.transpose(jnp.concatenate([out_f, out_b], axis=-1), (1, 0, 2))  # (B, L, 2H)
    hn = hn_k[:Bx]                                            # (B, 2H)
    return output, hn


def init_params(key):
    ks = jax.random.split(key, 8)
    k = 1.0 / jnp.sqrt(jnp.float32(H))

    def u(kk, shape):
        return jax.random.uniform(kk, shape, jnp.float32, -k, k)

    return dict(
        w_ih_f=u(ks[0], (4 * H, D)), w_hh_f=u(ks[1], (4 * H, H)),
        b_ih_f=u(ks[2], (4 * H,)),   b_hh_f=u(ks[3], (4 * H,)),
        w_ih_b=u(ks[4], (4 * H, D)), w_hh_b=u(ks[5], (4 * H, H)),
        b_ih_b=u(ks[6], (4 * H,)),   b_hh_b=u(ks[7], (4 * H,)),
    )


def reference(x, x_len, params):
    """Pure-JAX reference (same packed-sequence semantics) for a sanity check."""
    Bx, Lx, Dx = x.shape
    Hh = params['w_hh_f'].shape[1]

    def run(wi, wh, bi, bh, order):
        wiT, whT, bb = wi.T, wh.T, (bi + bh)[None, :]
        h = jnp.zeros((Bx, Hh), jnp.float32)
        c = jnp.zeros((Bx, Hh), jnp.float32)
        outs = [None] * Lx
        for t in order:
            g = x[:, t, :] @ wiT + h @ whT + bb
            i = jax.nn.sigmoid(g[:, :Hh]); f = jax.nn.sigmoid(g[:, Hh:2 * Hh])
            gg = jnp.tanh(g[:, 2 * Hh:3 * Hh]); o = jax.nn.sigmoid(g[:, 3 * Hh:])
            c_new = f * c + i * gg
            h_new = o * jnp.tanh(c_new)
            mm = (t < x_len)[:, None].astype(jnp.float32)
            outs[t] = mm * h_new
            h = mm * h_new + (1 - mm) * h
            c = mm * c_new + (1 - mm) * c
        return jnp.stack(outs, axis=1), h

    of, hf = run(params['w_ih_f'], params['w_hh_f'], params['b_ih_f'], params['b_hh_f'],
                 range(Lx))
    ob, hb = run(params['w_ih_b'], params['w_hh_b'], params['b_ih_b'], params['b_hh_b'],
                 reversed(range(Lx)))
    return jnp.concatenate([of, ob], -1), jnp.concatenate([hf, hb], -1)


if __name__ == "__main__":
    key = jax.random.PRNGKey(0)
    kx, kp = jax.random.split(key)
    x = jax.random.normal(kx, (B, L, D), jnp.float32)
    x_len = jnp.array([L, 6, 5, 3], jnp.int32)  # sorted descending (enforce_sorted=True)
    params = init_params(kp)

    output, hn = jax.block_until_ready(rnn_forward(x, x_len, params))

    ref_out, ref_hn = reference(x, x_len, params)
    assert output.shape == (B, L, 2 * H) and hn.shape == (B, 2 * H)
    assert jnp.allclose(output, ref_out, atol=1e-4, rtol=1e-4)
    assert jnp.allclose(hn, ref_hn, atol=1e-4, rtol=1e-4)
    print("KERNEL_OK")
</pallas_src>

<mosaic_0001>
module attributes {stable_mosaic.version = 11 : i64} {
  func.func @bilstm_fused_kernel(%arg0: memref<64x32xf32, #tpu.memory_space<vmem>>, %arg1: memref<32x128xf32, #tpu.memory_space<vmem>>, %arg2: memref<1x128xf32, #tpu.memory_space<vmem>>, %arg3: memref<32x128xf32, #tpu.memory_space<vmem>>, %arg4: memref<8x8x32xf32, #tpu.memory_space<vmem>>, %arg5: memref<8x8x32xf32, #tpu.memory_space<vmem>>, %arg6: memref<8x32xf32, #tpu.memory_space<vmem>>) attributes {dimension_semantics = [], scalar_prefetch = 0 : i64, scratch_operands = 0 : i64, tpu.core_type = #tpu.core_type<tc>} {
    %c0 = arith.constant 0 : index
    %c0_0 = arith.constant 0 : index
    %0 = vector.load %arg0[%c0, %c0_0] : memref<64x32xf32, #tpu.memory_space<vmem>>, vector<64x32xf32>
    %c0_1 = arith.constant 0 : index
    %c0_2 = arith.constant 0 : index
    %1 = vector.load %arg1[%c0_1, %c0_2] : memref<32x128xf32, #tpu.memory_space<vmem>>, vector<32x128xf32>
    %cst = arith.constant dense<0.000000e+00> : vector<64x128xf32>
    %2 = tpu.matmul %0, %1, %cst {dimension_numbers = #tpu.dot_dimension_numbers<[1], [0], [0], [1], [0, 0, 1, 1], [], []>} : vector<64x32xf32>, vector<32x128xf32>, vector<64x128xf32> -> vector<64x128xf32>
    %c0_3 = arith.constant 0 : index
    %c0_4 = arith.constant 0 : index
    %3 = vector.load %arg2[%c0_3, %c0_4] : memref<1x128xf32, #tpu.memory_space<vmem>>, vector<1x128xf32>
    %4 = vector.broadcast %3 : vector<1x128xf32> to vector<64x128xf32>
    %5 = arith.addf %2, %4 : vector<64x128xf32>
    %c0_5 = arith.constant 0 : index
    %c0_6 = arith.constant 0 : index
    %6 = vector.load %arg3[%c0_5, %c0_6] : memref<32x128xf32, #tpu.memory_space<vmem>>, vector<32x128xf32>
    %cst_7 = arith.constant 0.000000e+00 : f32
    %7 = vector.broadcast %cst_7 : f32 to vector<8x32xf32>
    %cst_8 = arith.constant 0.000000e+00 : f32
    %8 = vector.broadcast %cst_8 : f32 to vector<8x32xf32>
    %9 = vector.extract_strided_slice %5 {offsets = [0, 0], sizes = [8, 128], strides = [1, 1]} : vector<64x128xf32> to vector<8x128xf32>
    %cst_9 = arith.constant dense<0.000000e+00> : vector<8x128xf32>
    %10 = tpu.matmul %7, %6, %cst_9 {dimension_numbers = #tpu.dot_dimension_numbers<[1], [0], [0], [1], [0, 0, 1, 1], [], []>} : vector<8x32xf32>, vector<32x128xf32>, vector<8x128xf32> -> vector<8x128xf32>
    %11 = arith.addf %9, %10 : vector<8x128xf32>
    %12 = vector.extract_strided_slice %11 {offsets = [0, 0], sizes = [8, 96], strides = [1, 1]} : vector<8x128xf32> to vector<8x96xf32>
    %13 = arith.negf %12 : vector<8x96xf32>
    %14 = math.exp %13 : vector<8x96xf32>
    %cst_10 = arith.constant 1.000000e+00 : f32
    %15 = vector.broadcast %cst_10 : f32 to vector<8x96xf32>
    %16 = arith.addf %15, %14 : vector<8x96xf32>
    %17 = arith.divf %15, %16 : vector<8x96xf32>
    %18 = vector.extract_strided_slice %17 {offsets = [0, 0], sizes = [8, 32], strides = [1, 1]} : vector<8x96xf32> to vector<8x32xf32>
    %19 = vector.extract_strided_slice %17 {offsets = [0, 32], sizes = [8, 32], strides = [1, 1]} : vector<8x96xf32> to vector<8x32xf32>
    %20 = vector.extract_strided_slice %17 {offsets = [0, 64], sizes = [8, 32], strides = [1, 1]} : vector<8x96xf32> to vector<8x32xf32>
    %21 = vector.extract_strided_slice %11 {offsets = [0, 96], sizes = [8, 32], strides = [1, 1]} : vector<8x128xf32> to vector<8x32xf32>
    %22 = math.tanh %21 : vector<8x32xf32>
    %23 = arith.mulf %19, %8 : vector<8x32xf32>
    %24 = arith.mulf %18, %22 : vector<8x32xf32>
    %25 = arith.addf %23, %24 : vector<8x32xf32>
    %26 = math.tanh %25 : vector<8x32xf32>
    %27 = arith.mulf %20, %26 : vector<8x32xf32>
    %c0_11 = arith.constant 0 : index
    %c0_12 = arith.constant 0 : index
    %c0_13 = arith.constant 0 : index
    %28 = vector.load %arg4[%c0_11, %c0_12, %c0_13] : memref<8x8x32xf32, #tpu.memory_space<vmem>>, vector<1x8x32xf32>
    %29 = vector.shape_cast %28 : vector<1x8x32xf32> to vector<8x32xf32>
    %cst_14 = arith.constant 0.000000e+00 : f32
    %30 = vector.broadcast %cst_14 : f32 to vector<8x32xf32>
    %31 = arith.cmpf one, %29, %30 : vector<8x32xf32>
    %cst_15 = arith.constant 0.000000e+00 : f32
    %32 = vector.broadcast %cst_15 : f32 to vector<8x32xf32>
    %33 = arith.select %31, %27, %32 : vector<8x32xi1>, vector<8x32xf32>
    %c0_16 = arith.constant 0 : index
    %c0_17 = arith.constant 0 : index
    %c0_18 = arith.constant 0 : index
    %34 = vector.load %arg5[%c0_16, %c0_17, %c0_18] : memref<8x8x32xf32, #tpu.memory_space<vmem>>, vector<1x8x32xf32>
    %35 = vector.shape_cast %34 : vector<1x8x32xf32> to vector<8x32xf32>
    %36 = vector.shape_cast %33 : vector<8x32xf32> to vector<1x8x32xf32>
    tpu.vector_store %arg5[%c0_16, %c0_17, %c0_18], %36 {strides = array<i32>} : memref<8x8x32xf32, #tpu.memory_space<vmem>>, vector<1x8x32xf32>,
    %37 = arith.select %31, %27, %7 : vector<8x32xi1>, vector<8x32xf32>
    %38 = arith.select %31, %25, %8 : vector<8x32xi1>, vector<8x32xf32>
    %39 = vector.extract_strided_slice %5 {offsets = [8, 0], sizes = [8, 128], strides = [1, 1]} : vector<64x128xf32> to vector<8x128xf32>
    %cst_19 = arith.constant dense<0.000000e+00> : vector<8x128xf32>
    %40 = tpu.matmul %37, %6, %cst_19 {dimension_numbers = #tpu.dot_dimension_numbers<[1], [0], [0], [1], [0, 0, 1, 1], [], []>} : vector<8x32xf32>, vector<32x128xf32>, vector<8x128xf32> -> vector<8x128xf32>
    %41 = arith.addf %39, %40 : vector<8x128xf32>
    %42 = vector.extract_strided_slice %41 {offsets = [0, 0], sizes = [8, 96], strides = [1, 1]} : vector<8x128xf32> to vector<8x96xf32>
    %43 = arith.negf %42 : vector<8x96xf32>
    %44 = math.exp %43 : vector<8x96xf32>
    %cst_20 = arith.constant 1.000000e+00 : f32
    %45 = vector.broadcast %cst_20 : f32 to vector<8x96xf32>
    %46 = arith.addf %45, %44 : vector<8x96xf32>
    %47 = arith.divf %45, %46 : vector<8x96xf32>
    %48 = vector.extract_strided_slice %47 {offsets = [0, 0], sizes = [8, 32], strides = [1, 1]} : vector<8x96xf32> to vector<8x32xf32>
    %49 = vector.extract_strided_slice %47 {offsets = [0, 32], sizes = [8, 32], strides = [1, 1]} : vector<8x96xf32> to vector<8x32xf32>
    %50 = vector.extract_strided_slice %47 {offsets = [0, 64], sizes = [8, 32], strides = [1, 1]} : vector<8x96xf32> to vector<8x32xf32>
    %51 = vector.extract_strided_slice %41 {offsets = [0, 96], sizes = [8, 32], strides = [1, 1]} : vector<8x128xf32> to vector<8x32xf32>
    %52 = math.tanh %51 : vector<8x32xf32>
    %53 = arith.mulf %49, %38 : vector<8x32xf32>
    %54 = arith.mulf %48, %52 : vector<8x32xf32>
    %55 = arith.addf %53, %54 : vector<8x32xf32>
    %56 = math.tanh %55 : vector<8x32xf32>
    %57 = arith.mulf %50, %56 : vector<8x32xf32>
    %c1 = arith.constant 1 : index
    %c0_21 = arith.constant 0 : index
    %c0_22 = arith.constant 0 : index
    %58 = vector.load %arg4[%c1, %c0_21, %c0_22] : memref<8x8x32xf32, #tpu.memory_space<vmem>>, vector<1x8x32xf32>
    %59 = vector.shape_cast %58 : vector<1x8x32xf32> to vector<8x32xf32>
    %cst_23 = arith.constant 0.000000e+00 : f32
    %60 = vector.broadcast %cst_23 : f32 to vector<8x32xf32>
    %61 = arith.cmpf one, %59, %60 : vector<8x32xf32>
    %cst_24 = arith.constant 0.000000e+00 : f32
    %62 = vector.broadcast %cst_24 : f32 to vector<8x32xf32>
    %63 = arith.select %61, %57, %62 : vector<8x32xi1>, vector<8x32xf32>
    %c1_25 = arith.constant 1 : index
    %c0_26 = arith.constant 0 : index
    %c0_27 = arith.constant 0 : index
    %64 = vector.load %arg5[%c1_25, %c0_26, %c0_27] : memref<8x8x32xf32, #tpu.memory_space<vmem>>, vector<1x8x32xf32>
    %65 = vector.shape_cast %64 : vector<1x8x32xf32> to vector<8x32xf32>
    %66 = vector.shape_cast %63 : vector<8x32xf32> to vector<1x8x32xf32>
    tpu.vector_store %arg5[%c1_25, %c0_26, %c0_27], %66 {strides = array<i32>} : memref<8x8x32xf32, #tpu.memory_space<vmem>>, vector<1x8x32xf32>,
    %67 = arith.select %61, %57, %37 : vector<8x32xi1>, vector<8x32xf32>
    %68 = arith.select %61, %55, %38 : vector<8x32xi1>, vector<8x32xf32>
    %69 = vector.extract_strided_slice %5 {offsets = [16, 0], sizes = [8, 128], strides = [1, 1]} : vector<64x128xf32> to vector<8x128xf32>
    %cst_28 = arith.constant dense<0.000000e+00> : vector<8x128xf32>
    %70 = tpu.matmul %67, %6, %cst_28 {dimension_numbers = #tpu.dot_dimension_numbers<[1], [0], [0], [1], [0, 0, 1, 1], [], []>} : vector<8x32xf32>, vector<32x128xf32>, vector<8x128xf32> -> vector<8x128xf32>
    %71 = arith.addf %69, %70 : vector<8x128xf32>
    %72 = vector.extract_strided_slice %71 {offsets = [0, 0], sizes = [8, 96], strides = [1, 1]} : vector<8x128xf32> to vector<8x96xf32>
    %73 = arith.negf %72 : vector<8x96xf32>
    %74 = math.exp %73 : vector<8x96xf32>
    %cst_29 = arith.constant 1.000000e+00 : f32
    %75 = vector.broadcast %cst_29 : f32 to vector<8x96xf32>
    %76 = arith.addf %75, %74 : vector<8x96xf32>
    %77 = arith.divf %75, %76 : vector<8x96xf32>
    %78 = vector.extract_strided_slice %77 {offsets = [0, 0], sizes = [8, 32], strides = [1, 1]} : vector<8x96xf32> to vector<8x32xf32>
    %79 = vector.extract_strided_slice %77 {offsets = [0, 32], sizes = [8, 32], strides = [1, 1]} : vector<8x96xf32> to vector<8x32xf32>
    %80 = vector.extract_strided_slice %77 {offsets = [0, 64], sizes = [8, 32], strides = [1, 1]} : vector<8x96xf32> to vector<8x32xf32>
    %81 = vector.extract_strided_slice %71 {offsets = [0, 96], sizes = [8, 32], strides = [1, 1]} : vector<8x128xf32> to vector<8x32xf32>
    %82 = math.tanh %81 : vector<8x32xf32>
    %83 = arith.mulf %79, %68 : vector<8x32xf32>
    %84 = arith.mulf %78, %82 : vector<8x32xf32>
    %85 = arith.addf %83, %84 : vector<8x32xf32>
    %86 = math.tanh %85 : vector<8x32xf32>
    %87 = arith.mulf %80, %86 : vector<8x32xf32>
    %c2 = arith.constant 2 : index
    %c0_30 = arith.constant 0 : index
    %c0_31 = arith.constant 0 : index
    %88 = vector.load %arg4[%c2, %c0_30, %c0_31] : memref<8x8x32xf32, #tpu.memory_space<vmem>>, vector<1x8x32xf32>
    %89 = vector.shape_cast %88 : vector<1x8x32xf32> to vector<8x32xf32>
    %cst_32 = arith.constant 0.000000e+00 : f32
    %90 = vector.broadcast %cst_32 : f32 to vector<8x32xf32>
    %91 = arith.cmpf one, %89, %90 : vector<8x32xf32>
    %cst_33 = arith.constant 0.000000e+00 : f32
    %92 = vector.broadcast %cst_33 : f32 to vector<8x32xf32>
    %93 = arith.select %91, %87, %92 : vector<8x32xi1>, vector<8x32xf32>
    %c2_34 = arith.constant 2 : index
    %c0_35 = arith.constant 0 : index
    %c0_36 = arith.constant 0 : index
    %94 = vector.load %arg5[%c2_34, %c0_35, %c0_36] : memref<8x8x32xf32, #tpu.memory_space<vmem>>, vector<1x8x32xf32>
    %95 = vector.shape_cast %94 : vector<1x8x32xf32> to vector<8x32xf32>
    %96 = vector.shape_cast %93 : vector<8x32xf32> to vector<1x8x32xf32>
    tpu.vector_store %arg5[%c2_34, %c0_35, %c0_36], %96 {strides = array<i32>} : memref<8x8x32xf32, #tpu.memory_space<vmem>>, vector<1x8x32xf32>,
    %97 = arith.select %91, %87, %67 : vector<8x32xi1>, vector<8x32xf32>
    %98 = arith.select %91, %85, %68 : vector<8x32xi1>, vector<8x32xf32>
    %99 = vector.extract_strided_slice %5 {offsets = [24, 0], sizes = [8, 128], strides = [1, 1]} : vector<64x128xf32> to vector<8x128xf32>
    %cst_37 = arith.constant dense<0.000000e+00> : vector<8x128xf32>
    %100 = tpu.matmul %97, %6, %cst_37 {dimension_numbers = #tpu.dot_dimension_numbers<[1], [0], [0], [1], [0, 0, 1, 1], [], []>} : vector<8x32xf32>, vector<32x128xf32>, vector<8x128xf32> -> vector<8x128xf32>
    %101 = arith.addf %99, %100 : vector<8x128xf32>
    %102 = vector.extract_strided_slice %101 {offsets = [0, 0], sizes = [8, 96], strides = [1, 1]} : vector<8x128xf32> to vector<8x96xf32>
    %103 = arith.negf %102 : vector<8x96xf32>
    %104 = math.exp %103 : vector<8x96xf32>
    %cst_38 = arith.constant 1.000000e+00 : f32
    %105 = vector.broadcast %cst_38 : f32 to vector<8x96xf32>
    %106 = arith.addf %105, %104 : vector<8x96xf32>
    %107 = arith.divf %105, %106 : vector<8x96xf32>
    %108 = vector.extract_strided_slice %107 {offsets = [0, 0], sizes = [8, 32], strides = [1, 1]} : vector<8x96xf32> to vector<8x32xf32>
    %109 = vector.extract_strided_slice %107 {offsets = [0, 32], sizes = [8, 32], strides = [1, 1]} : vector<8x96xf32> to vector<8x32xf32>
    %110 = vector.extract_strided_slice %107 {offsets = [0, 64], sizes = [8, 32], strides = [1, 1]} : vector<8x96xf32> to vector<8x32xf32>
    %111 = vector.extract_strided_slice %101 {offsets = [0, 96], sizes = [8, 32], strides = [1, 1]} : vector<8x128xf32> to vector<8x32xf32>
    %112 = math.tanh %111 : vector<8x32xf32>
    %113 = arith.mulf %109, %98 : vector<8x32xf32>
    %114 = arith.mulf %108, %112 : vector<8x32xf32>
    %115 = arith.addf %113, %114 : vector<8x32xf32>
    %116 = math.tanh %115 : vector<8x32xf32>
    %117 = arith.mulf %110, %116 : vector<8x32xf32>
    %c3 = arith.constant 3 : index
    %c0_39 = arith.constant 0 : index
    %c0_40 = arith.constant 0 : index
    %118 = vector.load %arg4[%c3, %c0_39, %c0_40] : memref<8x8x32xf32, #tpu.memory_space<vmem>>, vector<1x8x32xf32>
    %119 = vector.shape_cast %118 : vector<1x8x32xf32> to vector<8x32xf32>
    %cst_41 = arith.constant 0.000000e+00 : f32
    %120 = vector.broadcast %cst_41 : f32 to vector<8x32xf32>
    %121 = arith.cmpf one, %119, %120 : vector<8x32xf32>
    %cst_42 = arith.constant 0.000000e+00 : f32
    %122 = vector.broadcast %cst_42 : f32 to vector<8x32xf32>
    %123 = arith.select %121, %117, %122 : vector<8x32xi1>, vector<8x32xf32>
    %c3_43 = arith.constant 3 : index
    %c0_44 = arith.constant 0 : index
    %c0_45 = arith.constant 0 : index
    %124 = vector.load %arg5[%c3_43, %c0_44, %c0_45] : memref<8x8x32xf32, #tpu.memory_space<vmem>>, vector<1x8x32xf32>
    %125 = vector.shape_cast %124 : vector<1x8x32xf32> to vector<8x32xf32>
    %126 = vector.shape_cast %123 : vector<8x32xf32> to vector<1x8x32xf32>
    tpu.vector_store %arg5[%c3_43, %c0_44, %c0_45], %126 {strides = array<i32>} : memref<8x8x32xf32, #tpu.memory_space<vmem>>, vector<1x8x32xf32>,
    %127 = arith.select %121, %117, %97 : vector<8x32xi1>, vector<8x32xf32>
    %128 = arith.select %121, %115, %98 : vector<8x32xi1>, vector<8x32xf32>
    %129 = vector.extract_strided_slice %5 {offsets = [32, 0], sizes = [8, 128], strides = [1, 1]} : vector<64x128xf32> to vector<8x128xf32>
    %cst_46 = arith.constant dense<0.000000e+00> : vector<8x128xf32>
    %130 = tpu.matmul %127, %6, %cst_46 {dimension_numbers = #tpu.dot_dimension_numbers<[1], [0], [0], [1], [0, 0, 1, 1], [], []>} : vector<8x32xf32>, vector<32x128xf32>, vector<8x128xf32> -> vector<8x128xf32>
    %131 = arith.addf %129, %130 : vector<8x128xf32>
    %132 = vector.extract_strided_slice %131 {offsets = [0, 0], sizes = [8, 96], strides = [1, 1]} : vector<8x128xf32> to vector<8x96xf32>
    %133 = arith.negf %132 : vector<8x96xf32>
    %134 = math.exp %133 : vector<8x96xf32>
    %cst_47 = arith.constant 1.000000e+00 : f32
    %135 = vector.broadcast %cst_47 : f32 to vector<8x96xf32>
    %136 = arith.addf %135, %134 : vector<8x96xf32>
    %137 = arith.divf %135, %136 : vector<8x96xf32>
    %138 = vector.extract_strided_slice %137 {offsets = [0, 0], sizes = [8, 32], strides = [1, 1]} : vector<8x96xf32> to vector<8x32xf32>
    %139 = vector.extract_strided_slice %137 {offsets = [0, 32], sizes = [8, 32], strides = [1, 1]} : vector<8x96xf32> to vector<8x32xf32>
    %140 = vector.extract_strided_slice %137 {offsets = [0, 64], sizes = [8, 32], strides = [1, 1]} : vector<8x96xf32> to vector<8x32xf32>
    %141 = vector.extract_strided_slice %131 {offsets = [0, 96], sizes = [8, 32], strides = [1, 1]} : vector<8x128xf32> to vector<8x32xf32>
    %142 = math.tanh %141 : vector<8x32xf32>
    %143 = arith.mulf %139, %128 : vector<8x32xf32>
    %144 = arith.mulf %138, %142 : vector<8x32xf32>
    %145 = arith.addf %143, %144 : vector<8x32xf32>
    %146 = math.tanh %145 : vector<8x32xf32>
    %147 = arith.mulf %140, %146 : vector<8x32xf32>
    %c4 = arith.constant 4 : index
    %c0_48 = arith.constant 0 : index
    %c0_49 = arith.constant 0 : index
    %148 = vector.load %arg4[%c4, %c0_48, %c0_49] : memref<8x8x32xf32, #tpu.memory_space<vmem>>, vector<1x8x32xf32>
    %149 = vector.shape_cast %148 : vector<1x8x32xf32> to vector<8x32xf32>
    %cst_50 = arith.constant 0.000000e+00 : f32
    %150 = vector.broadcast %cst_50 : f32 to vector<8x32xf32>
    %151 = arith.cmpf one, %149, %150 : vector<8x32xf32>
    %cst_51 = arith.constant 0.000000e+00 : f32
    %152 = vector.broadcast %cst_51 : f32 to vector<8x32xf32>
    %153 = arith.select %151, %147, %152 : vector<8x32xi1>, vector<8x32xf32>
    %c4_52 = arith.constant 4 : index
    %c0_53 = arith.constant 0 : index
    %c0_54 = arith.constant 0 : index
    %154 = vector.load %arg5[%c4_52, %c0_53, %c0_54] : memref<8x8x32xf32, #tpu.memory_space<vmem>>, vector<1x8x32xf32>
    %155 = vector.shape_cast %154 : vector<1x8x32xf32> to vector<8x32xf32>
    %156 = vector.shape_cast %153 : vector<8x32xf32> to vector<1x8x32xf32>
    tpu.vector_store %arg5[%c4_52, %c0_53, %c0_54], %156 {strides = array<i32>} : memref<8x8x32xf32, #tpu.memory_space<vmem>>, vector<1x8x32xf32>,
    %157 = arith.select %151, %147, %127 : vector<8x32xi1>, vector<8x32xf32>
    %158 = arith.select %151, %145, %128 : vector<8x32xi1>, vector<8x32xf32>
    %159 = vector.extract_strided_slice %5 {offsets = [40, 0], sizes = [8, 128], strides = [1, 1]} : vector<64x128xf32> to vector<8x128xf32>
    %cst_55 = arith.constant dense<0.000000e+00> : vector<8x128xf32>
    %160 = tpu.matmul %157, %6, %cst_55 {dimension_numbers = #tpu.dot_dimension_numbers<[1], [0], [0], [1], [0, 0, 1, 1], [], []>} : vector<8x32xf32>, vector<32x128xf32>, vector<8x128xf32> -> vector<8x128xf32>
    %161 = arith.addf %159, %160 : vector<8x128xf32>
    %162 = vector.extract_strided_slice %161 {offsets = [0, 0], sizes = [8, 96], strides = [1, 1]} : vector<8x128xf32> to vector<8x96xf32>
    %163 = arith.negf %162 : vector<8x96xf32>
    %164 = math.exp %163 : vector<8x96xf32>
    %cst_56 = arith.constant 1.000000e+00 : f32
    %165 = vector.broadcast %cst_56 : f32 to vector<8x96xf32>
    %166 = arith.addf %165, %164 : vector<8x96xf32>
    %167 = arith.divf %165, %166 : vector<8x96xf32>
    %168 = vector.extract_strided_slice %167 {offsets = [0, 0], sizes = [8, 32], strides = [1, 1]} : vector<8x96xf32> to vector<8x32xf32>
    %169 = vector.extract_strided_slice %167 {offsets = [0, 32], sizes = [8, 32], strides = [1, 1]} : vector<8x96xf32> to vector<8x32xf32>
    %170 = vector.extract_strided_slice %167 {offsets = [0, 64], sizes = [8, 32], strides = [1, 1]} : vector<8x96xf32> to vector<8x32xf32>
    %171 = vector.extract_strided_slice %161 {offsets = [0, 96], sizes = [8, 32], strides = [1, 1]} : vector<8x128xf32> to vector<8x32xf32>
    %172 = math.tanh %171 : vector<8x32xf32>
    %173 = arith.mulf %169, %158 : vector<8x32xf32>
    %174 = arith.mulf %168, %172 : vector<8x32xf32>
    %175 = arith.addf %173, %174 : vector<8x32xf32>
    %176 = math.tanh %175 : vector<8x32xf32>
    %177 = arith.mulf %170, %176 : vector<8x32xf32>
    %c5 = arith.constant 5 : index
    %c0_57 = arith.constant 0 : index
    %c0_58 = arith.constant 0 : index
    %178 = vector.load %arg4[%c5, %c0_57, %c0_58] : memref<8x8x32xf32, #tpu.memory_space<vmem>>, vector<1x8x32xf32>
    %179 = vector.shape_cast %178 : vector<1x8x32xf32> to vector<8x32xf32>
    %cst_59 = arith.constant 0.000000e+00 : f32
    %180 = vector.broadcast %cst_59 : f32 to vector<8x32xf32>
    %181 = arith.cmpf one, %179, %180 : vector<8x32xf32>
    %cst_60 = arith.constant 0.000000e+00 : f32
    %182 = vector.broadcast %cst_60 : f32 to vector<8x32xf32>
    %183 = arith.select %181, %177, %182 : vector<8x32xi1>, vector<8x32xf32>
    %c5_61 = arith.constant 5 : index
    %c0_62 = arith.constant 0 : index
    %c0_63 = arith.constant 0 : index
    %184 = vector.load %arg5[%c5_61, %c0_62, %c0_63] : memref<8x8x32xf32, #tpu.memory_space<vmem>>, vector<1x8x32xf32>
    %185 = vector.shape_cast %184 : vector<1x8x32xf32> to vector<8x32xf32>
    %186 = vector.shape_cast %183 : vector<8x32xf32> to vector<1x8x32xf32>
    tpu.vector_store %arg5[%c5_61, %c0_62, %c0_63], %186 {strides = array<i32>} : memref<8x8x32xf32, #tpu.memory_space<vmem>>, vector<1x8x32xf32>,
    %187 = arith.select %181, %177, %157 : vector<8x32xi1>, vector<8x32xf32>
    %188 = arith.select %181, %175, %158 : vector<8x32xi1>, vector<8x32xf32>
    %189 = vector.extract_strided_slice %5 {offsets = [48, 0], sizes = [8, 128], strides = [1, 1]} : vector<64x128xf32> to vector<8x128xf32>
    %cst_64 = arith.constant dense<0.000000e+00> : vector<8x128xf32>
    %190 = tpu.matmul %187, %6, %cst_64 {dimension_numbers = #tpu.dot_dimension_numbers<[1], [0], [0], [1], [0, 0, 1, 1], [], []>} : vector<8x32xf32>, vector<32x128xf32>, vector<8x128xf32> -> vector<8x128xf32>
    %191 = arith.addf %189, %190 : vector<8x128xf32>
    %192 = vector.extract_strided_slice %191 {offsets = [0, 0], sizes = [8, 96], strides = [1, 1]} : vector<8x128xf32> to vector<8x96xf32>
    %193 = arith.negf %192 : vector<8x96xf32>
    %194 = math.exp %193 : vector<8x96xf32>
    %cst_65 = arith.constant 1.000000e+00 : f32
    %195 = vector.broadcast %cst_65 : f32 to vector<8x96xf32>
    %196 = arith.addf %195, %194 : vector<8x96xf32>
    %197 = arith.divf %195, %196 : vector<8x96xf32>
    %198 = vector.extract_strided_slice %197 {offsets = [0, 0], sizes = [8, 32], strides = [1, 1]} : vector<8x96xf32> to vector<8x32xf32>
    %199 = vector.extract_strided_slice %197 {offsets = [0, 32], sizes = [8, 32], strides = [1, 1]} : vector<8x96xf32> to vector<8x32xf32>
    %200 = vector.extract_strided_slice %197 {offsets = [0, 64], sizes = [8, 32], strides = [1, 1]} : vector<8x96xf32> to vector<8x32xf32>
    %201 = vector.extract_strided_slice %191 {offsets = [0, 96], sizes = [8, 32], strides = [1, 1]} : vector<8x128xf32> to vector<8x32xf32>
    %202 = math.tanh %201 : vector<8x32xf32>
    %203 = arith.mulf %199, %188 : vector<8x32xf32>
    %204 = arith.mulf %198, %202 : vector<8x32xf32>
    %205 = arith.addf %203, %204 : vector<8x32xf32>
    %206 = math.tanh %205 : vector<8x32xf32>
    %207 = arith.mulf %200, %206 : vector<8x32xf32>
    %c6 = arith.constant 6 : index
    %c0_66 = arith.constant 0 : index
    %c0_67 = arith.constant 0 : index
    %208 = vector.load %arg4[%c6, %c0_66, %c0_67] : memref<8x8x32xf32, #tpu.memory_space<vmem>>, vector<1x8x32xf32>
    %209 = vector.shape_cast %208 : vector<1x8x32xf32> to vector<8x32xf32>
    %cst_68 = arith.constant 0.000000e+00 : f32
    %210 = vector.broadcast %cst_68 : f32 to vector<8x32xf32>
    %211 = arith.cmpf one, %209, %210 : vector<8x32xf32>
    %cst_69 = arith.constant 0.000000e+00 : f32
    %212 = vector.broadcast %cst_69 : f32 to vector<8x32xf32>
    %213 = arith.select %211, %207, %212 : vector<8x32xi1>, vector<8x32xf32>
    %c6_70 = arith.constant 6 : index
    %c0_71 = arith.constant 0 : index
    %c0_72 = arith.constant 0 : index
    %214 = vector.load %arg5[%c6_70, %c0_71, %c0_72] : memref<8x8x32xf32, #tpu.memory_space<vmem>>, vector<1x8x32xf32>
    %215 = vector.shape_cast %214 : vector<1x8x32xf32> to vector<8x32xf32>
    %216 = vector.shape_cast %213 : vector<8x32xf32> to vector<1x8x32xf32>
    tpu.vector_store %arg5[%c6_70, %c0_71, %c0_72], %216 {strides = array<i32>} : memref<8x8x32xf32, #tpu.memory_space<vmem>>, vector<1x8x32xf32>,
    %217 = arith.select %211, %207, %187 : vector<8x32xi1>, vector<8x32xf32>
    %218 = arith.select %211, %205, %188 : vector<8x32xi1>, vector<8x32xf32>
    %219 = vector.extract_strided_slice %5 {offsets = [56, 0], sizes = [8, 128], strides = [1, 1]} : vector<64x128xf32> to vector<8x128xf32>
    %cst_73 = arith.constant dense<0.000000e+00> : vector<8x128xf32>
    %220 = tpu.matmul %217, %6, %cst_73 {dimension_numbers = #tpu.dot_dimension_numbers<[1], [0], [0], [1], [0, 0, 1, 1], [], []>} : vector<8x32xf32>, vector<32x128xf32>, vector<8x128xf32> -> vector<8x128xf32>
    %221 = arith.addf %219, %220 : vector<8x128xf32>
    %222 = vector.extract_strided_slice %221 {offsets = [0, 0], sizes = [8, 96], strides = [1, 1]} : vector<8x128xf32> to vector<8x96xf32>
    %223 = arith.negf %222 : vector<8x96xf32>
    %224 = math.exp %223 : vector<8x96xf32>
    %cst_74 = arith.constant 1.000000e+00 : f32
    %225 = vector.broadcast %cst_74 : f32 to vector<8x96xf32>
    %226 = arith.addf %225, %224 : vector<8x96xf32>
    %227 = arith.divf %225, %226 : vector<8x96xf32>
    %228 = vector.extract_strided_slice %227 {offsets = [0, 0], sizes = [8, 32], strides = [1, 1]} : vector<8x96xf32> to vector<8x32xf32>
    %229 = vector.extract_strided_slice %227 {offsets = [0, 32], sizes = [8, 32], strides = [1, 1]} : vector<8x96xf32> to vector<8x32xf32>
    %230 = vector.extract_strided_slice %227 {offsets = [0, 64], sizes = [8, 32], strides = [1, 1]} : vector<8x96xf32> to vector<8x32xf32>
    %231 = vector.extract_strided_slice %221 {offsets = [0, 96], sizes = [8, 32], strides = [1, 1]} : vector<8x128xf32> to vector<8x32xf32>
    %232 = math.tanh %231 : vector<8x32xf32>
    %233 = arith.mulf %229, %218 : vector<8x32xf32>
    %234 = arith.mulf %228, %232 : vector<8x32xf32>
    %235 = arith.addf %233, %234 : vector<8x32xf32>
    %236 = math.tanh %235 : vector<8x32xf32>
    %237 = arith.mulf %230, %236 : vector<8x32xf32>
    %c7 = arith.constant 7 : index
    %c0_75 = arith.constant 0 : index
    %c0_76 = arith.constant 0 : index
    %238 = vector.load %arg4[%c7, %c0_75, %c0_76] : memref<8x8x32xf32, #tpu.memory_space<vmem>>, vector<1x8x32xf32>
    %239 = vector.shape_cast %238 : vector<1x8x32xf32> to vector<8x32xf32>
    %cst_77 = arith.constant 0.000000e+00 : f32
    %240 = vector.broadcast %cst_77 : f32 to vector<8x32xf32>
    %241 = arith.cmpf one, %239, %240 : vector<8x32xf32>
    %cst_78 = arith.constant 0.000000e+00 : f32
    %242 = vector.broadcast %cst_78 : f32 to vector<8x32xf32>
    %243 = arith.select %241, %237, %242 : vector<8x32xi1>, vector<8x32xf32>
    %c7_79 = arith.constant 7 : index
    %c0_80 = arith.constant 0 : index
    %c0_81 = arith.constant 0 : index
    %244 = vector.load %arg5[%c7_79, %c0_80, %c0_81] : memref<8x8x32xf32, #tpu.memory_space<vmem>>, vector<1x8x32xf32>
    %245 = vector.shape_cast %244 : vector<1x8x32xf32> to vector<8x32xf32>
    %246 = vector.shape_cast %243 : vector<8x32xf32> to vector<1x8x32xf32>
    tpu.vector_store %arg5[%c7_79, %c0_80, %c0_81], %246 {strides = array<i32>} : memref<8x8x32xf32, #tpu.memory_space<vmem>>, vector<1x8x32xf32>,
    %247 = arith.select %241, %237, %217 : vector<8x32xi1>, vector<8x32xf32>
    %c0_82 = arith.constant 0 : index
    %c0_83 = arith.constant 0 : index
    %248 = vector.load %arg6[%c0_82, %c0_83] : memref<8x32xf32, #tpu.memory_space<vmem>>, vector<8x32xf32>
    tpu.vector_store %arg6[%c0_82, %c0_83], %247 {strides = array<i32>} : memref<8x32xf32, #tpu.memory_space<vmem>>, vector<8x32xf32>,
    return
  }
}

</mosaic_0001>

<bundles_post_ra>
// kernel: tpu_custom_call.1
= control target key start
LH: loop header
LB: loop body
LE: loop exit
PB: predicated region body
PF: predicated region fallthrough
CT: control target
= control target key end

     0   :  { %12 = vsyncpa [#allocation3], 0  ;;  %s1257_s0 = inlined_call_operand.vmem [shape: f32[64,32], index: 0, kind: input, shape index: {}]   ;;  %s1258_s1 = inlined_call_operand.vmem [shape: f32[32,128], index: 1, kind: input, shape index: {}]   ;;  %s1259_s2 = inlined_call_operand.vmem [shape: f32[1,128], index: 2, kind: input, shape index: {}]   ;;  %s1260_s3 = inlined_call_operand.hbm [shape: f32[32,128], index: 3, kind: input, shape index: {}]   ;;  %s1261_s4 = inlined_call_operand.vmem [shape: f32[8,8,32], index: 4, kind: input, shape index: {}]   ;;  %s1262_s5 = inlined_call_operand.hbm [shape: f32[8,8,32], index: 5, kind: output, shape index: {0}]   ;;  %s1263_s6 = inlined_call_operand.hbm [shape: f32[8,32], index: 6, kind: output, shape index: {1}]  }
   0x1   :  { %13 = vsyncpa [#allocation4], 0 }
   0x2   :  { %14 = vsyncpa [#allocation7], 0  ;;  %s25_s23 = sshll.u32 %s1260_s3, 4  ;;  %s992_s24 = smov [#allocation2]   ;;  %s26_s23 = int_to_ptr.hbm [resolvable:$true] %s25_s23 }
   0x3   :  { %s27_s25 = sshll.u32 %s992_s24, 4  ;;  %s993_s26 = smov 128   ;;  %s28_s25 = int_to_ptr.vmem [resolvable:$true] %s27_s25 }
   0x4   :  { %s994_s27 = smov 8  }
   0x5   :  { %33 = dma.hbm_to_vmem [thread:$0]  %s26_s23, 512, %s28_s25, [#allocation3], %s993_s26, %s993_s26, %s994_s27  }
   0x6   :  { %986 = dma.done.wait [#allocation3], 512  }
   0x7   :  { %987 = vsyncadd [#allocation3], 4294966784  ;;  %v51_v0 = vld [vmem:[%s1258_s1 + $0x18] sm:$0xff]  ;;  %v50_v1 = vld [vmem:[%s1258_s1 + $0x10] sm:$0xff]  ;;  %vm56_vm0 = vcmask 261120   ;;  %v995_v10 = vmov 0.0  }
   0x8   :  { %828 = vmatpush.msra.mxu1 %v51_v0  ;;  %93 = vmatpush.msra.mxu0 %v51_v0  ;;  %v49_v2 = vld [vmem:[%s1258_s1 + $0x8] sm:$0xff]  ;;  %v48_v3 = vld [vmem:[%s1258_s1] sm:$0xff]  ;;  %v1060_v6 = vld [vmem:[#allocation2 + $0x18] sm:$0xff]  ;;  %s996_s16 = smov 32   ;;  %s998_s19 = smov 64  }
   0x9   :  { %829 = vmatpush.msra.mxu2 %v51_v0  ;;  %830 = vmatpush.msra.mxu3 %v51_v0  ;;  %v44_v4 = vld [vmem:[%s1257_s0 + $0x20] sm:$0xff]  ;;  %v1063_v7 = vld [vmem:[#allocation2 + $0x10] sm:$0xff]  ;;  %v1067_v8 = vld [vmem:[#allocation2 + $0x8] sm:$0xff]  ;;  %s999_s22 = smov [#allocation5]   ;;  %s769_s28 = sshll.u32 %s1262_s5, 4  ;;  %s770_s28 = int_to_ptr.hbm [resolvable:$true] %s769_s28 }
   0xa   :  { %831 = vmatpush.msra.mxu1 %v50_v1  ;;  %94 = vmatpush.msra.mxu0 %v50_v1  ;;  %v40_v5 = vld [vmem:[%s1257_s0] sm:$0xff]  ;;  %v45_v42 = vld [vmem:[%s1257_s0 + $0x28] sm:$0xff]  ;;  %s767_s23 = sshll.u32 %s999_s22, 4  ;;  %s1000_s29 = smov [#allocation6]   ;;  %s768_s23 = int_to_ptr.vmem [resolvable:$true] %s767_s23 }
   0xb   :  { %832 = vmatpush.msra.mxu2 %v50_v1  ;;  %833 = vmatpush.msra.mxu3 %v50_v1  ;;  %v1072_v9 = vld [vmem:[#allocation2] sm:$0xff]  ;;  %v41_v43 = vld [vmem:[%s1257_s0 + $0x8] sm:$0xff]  ;;  %s781_s30 = sshll.u32 %s1000_s29, 4  ;;  %s782_s30 = int_to_ptr.vmem [resolvable:$true] %s781_s30 }
   0xc   :  { %834 = vmatpush.msra.mxu1 %v49_v2  ;;  %95 = vmatpush.msra.mxu0 %v49_v2  ;;  %v1095_v13 = vld [vmem:[%s1259_s2] ss:$0 sm:$0xff]  ;;  %s997_s2 = smov 96  }
   0xd   :  { %835 = vmatpush.msra.mxu2 %v49_v2  ;;  %836 = vmatpush.msra.mxu3 %v49_v2  ;;  %v187_v37 = vld [vmem:[%s1261_s4] sm:$0xff] }
   0xe   :  { %837 = vmatpush.msra.mxu1 %v48_v3  ;;  %96 = vmatpush.msra.mxu0 %v48_v3  ;;  %vm188_vm5 = vcmp.ne.f32.partialorder %v187_v37, 0.0 }
   0xf   :  { %802 = vmatmul.msk.f32.vlgmr.msra.gmra.mxu1 %vm56_vm0, %v44_v4  ;;  %798 = vmatmul.msk.f32.vlgmr.msra.gmra.mxu0 %vm56_vm0, %v40_v5 }
  0x10   :  { %141 = vmatpush.msrb.mxu1 %v1060_v6  ;;  %838 = vmatpush.msra.mxu2 %v48_v3 }
  0x11   :  { %839 = vmatpush.msra.mxu3 %v48_v3  ;;  %803 = vmatmul.msk.f32.vlgmr.msra.gmra.mxu2 %vm56_vm0, %v45_v42 }
  0x12   :  { %215 = vmatpush.msrb.mxu2 %v1060_v6  ;;  %142 = vmatpush.msrb.mxu1 %v1063_v7 }
  0x13   :  { %296 = vmatpush.msrb.mxu3 %v1060_v6 }
  0x14   :  { %216 = vmatpush.msrb.mxu2 %v1063_v7  ;;  %143 = vmatpush.msrb.mxu1 %v1067_v8 }
  0x15   :  { %297 = vmatpush.msrb.mxu3 %v1063_v7 }
  0x16   :  { %217 = vmatpush.msrb.mxu2 %v1067_v8  ;;  %144 = vmatpush.msrb.mxu1 %v1072_v9 }
  0x17   :  { %298 = vmatpush.msrb.mxu3 %v1067_v8  ;;  %145 = vmatmul.f32.vlgmr.msrb.gmra.mxu1 %v995_v10 }
  0x18   :  { %218 = vmatpush.msrb.mxu2 %v1072_v9  ;;  %377 = vmatpush.msra.mxu1 %v1060_v6 }
  0x19   :  { %299 = vmatpush.msrb.mxu3 %v1072_v9  ;;  %799 = vmatmul.msk.f32.gmra.mxu0 %vm56_vm0, %v41_v43 }
  0x1a   :  { %378 = vmatpush.msra.mxu1 %v1063_v7  ;;  %458 = vmatpush.msra.mxu2 %v1060_v6 }
  0x1c   :  { %379 = vmatpush.msra.mxu1 %v1067_v8  ;;  %459 = vmatpush.msra.mxu2 %v1063_v7 }
  0x1e   :  { %380 = vmatpush.msra.mxu1 %v1072_v9  ;;  %460 = vmatpush.msra.mxu2 %v1067_v8 }
  0x20   :  { %620 = vmatpush.msrb.mxu1 %v1060_v6  ;;  %461 = vmatpush.msra.mxu2 %v1072_v9 }
  0x22   :  { %621 = vmatpush.msrb.mxu1 %v1063_v7 }
  0x24   :  { %622 = vmatpush.msrb.mxu1 %v1067_v8 }
  0x26   :  { %623 = vmatpush.msrb.mxu1 %v1072_v9 }
  0x8c   :  { %v1090_v11 = vpop.f32.mrf.mxu1  ;;  %v98_v12 = vpop.f32.mrf.mxu0 }
  0x8d   :  { %v99_v14 = vadd.f32 %v1095_v13, %v98_v12 }
  0x94   :  { %v146_v15 = vpop.f32.mrf.mxu1  ;;  %v1134_v46 = vpop.f32.mrf.mxu2 }
  0x95   :  { %v149_v16 = vadd.f32 %v146_v15, %v99_v14  ;;  %v46_v14 = vld [vmem:[%s1257_s0 + $0x30] sm:$0xff]  ;;  %v47_v15 = vld [vmem:[%s1257_s0 + $0x38] sm:$0xff] }
  0x96   :  { %v101_v47 = vpop.f32.mrf.mxu0  ;;  %804 = vmatmul.msk.f32.vlgmr.msra.gmra.mxu3 %vm56_vm0, %v46_v14 }
  0x97   :  { %850 = vtanh.f32 %v149_v16  ;;  %v806_v18 = vmul.f32 -1.442695, %v149_v16  ;;  %v102_v48 = vadd.f32 %v1095_v13, %v101_v47  ;;  %539 = vmatpush.msra.mxu3 %v1060_v6 }
  0x99   :  { %852 = vpow2.f32 %v806_v18  ;;  %540 = vmatpush.msra.mxu3 %v1063_v7 }
  0x9b   :  { %541 = vmatpush.msra.mxu3 %v1067_v8 }
  0x9d   :  { %v851_v17 = vpop.eup %850  ;;  %542 = vmatpush.msra.mxu3 %v1072_v9 }
  0x9e   :  { %172 = vrot.lane.b32.xlu0 %v851_v17, %s996_s16  ;;  %805 = vmatmul.msk.f32.gmra.mxu3 %vm56_vm0, %v47_v15 }
  0x9f   :  { %v853_v19 = vpop.eup %852 }
  0xa0   :  { %v153_v20 = vadd.f32 1.0, %v853_v19 }
  0xa2   :  { %854 = vrcp.f32 %v153_v20  ;;  %v165_v26 = vand.u32 2147483648, %v153_v20  ;;  %vm159_vm2 = vweird.f32 %v153_v20  ;;  %v163_v27 = vand.u32 2147483647, %v153_v20 }
  0xa4   :  { %v166_v29 = vor.u32 1.1754944e-38, %v165_v26  ;;  %vm164_vm4 = vcmp.eq.f32.partialorder %v163_v27, 8.507059e+37 }
  0xa8   :  { %v855_v21 = vpop.eup %854 }
  0xa9   :  { %v155_v22 = vmul.f32 %v855_v21, %v153_v20  ;;  %vm160_vm1 = vweird.f32 %v855_v21 }
  0xaa   :  { %vm161_vm3 = vmor %vm159_vm2, %vm160_vm1 }
  0xab   :  { %v156_v23 = vsub.f32 1.0, %v155_v22 }
  0xad   :  { %v157_v24 = vmul.f32 %v855_v21, %v156_v23 }
  0xaf   :  { %v158_v25 = vadd.f32 %v855_v21, %v157_v24 }
  0xb1   :  { %v162_v28 = vsel %vm161_vm3, %v855_v21, %v158_v25 }
  0xb2   :  { %v167_v31 = vsel %vm164_vm4, %v166_v29, %v162_v28 }
  0xb3   :  { %v170_v33 = vmul.f32 0.0, %v167_v31 }
 0x110   :  { %v173_v30 = vpop.permute.xlu0 %172 }
 0x111   :  { %v175_v32 = vmul.f32 %v173_v30, %v167_v31 }
 0x113   :  { %177 = vrot.lane.b32.xlu0 %v175_v32, %s996_s16 }
 0x119   :  { %v1166_v21 = vpop.f32.mrf.mxu3 }
 0x121   :  { %v1168_v22 = vpop.f32.mrf.mxu3 }
 0x185   :  { %v178_v34 = vpop.permute.xlu0 %177 }
 0x186   :  { %v180_v35 = vadd.f32 %v178_v34, %v170_v33 }
 0x188   :  { %856 = vtanh.f32 %v180_v35  ;;  %196 = vrot.lane.b32.xlu2 %v180_v35, %s997_s2 }
 0x18e   :  { %v857_v36 = vpop.eup %856 }
 0x18f   :  { %183 = vrot.lane.b32.xlu1 %v857_v36, %s996_s16 }
 0x1e2   :  { %v197_v38 = vpop.permute.xlu2 %196 }
 0x1e3   :  { %v1106_v39 = vsel %vm188_vm5, %v197_v38, 0.0 }
 0x1e4   :  { %245 = vrot.lane.b32.xlu0 %v1106_v39, %s996_s16 }
 0x201   :  { %v184_v40 = vpop.permute.xlu1 %183 }
 0x202   :  { %v186_v41 = vmul.f32 %v184_v40, %v167_v31 }
 0x204   :  { %190 = vrot.lane.b32.xlu1 %v186_v41, %s998_s19 }
 0x256   :  { %v246_v3 = vpop.permute.xlu0 %245 }
 0x276   :  { %v191_v44 = vpop.permute.xlu1 %190 }
 0x277   :  { %v1124_v45 = vsel %vm188_vm5, %v191_v44, 0.0 }
 0x278   :  { %194 = vst.msk [vmem:[#allocation5] sm:$0xff] %vm56_vm0, %v1124_v45  ;;  %807 = vmatmul.msk.f32.vlgmr.msrb.gmra.mxu2 %vm56_vm0, %v1124_v45 }
 0x279   :  { %701 = vmatpush.msrb.mxu2 %v1060_v6  ;;  %v809_v6 = vld [vmem:[%s1261_s4 + $0x8] sm:$0xff] }
 0x27a   :  { %vm267_vm10 = vcmp.ne.f32.partialorder %v809_v6, 0.0 }
 0x27b   :  { %702 = vmatpush.msrb.mxu2 %v1063_v7 }
 0x27d   :  { %703 = vmatpush.msrb.mxu2 %v1067_v8  ;;  %v42_v8 = vld [vmem:[%s1257_s0 + $0x10] sm:$0xff] }
 0x27e   :  { %800 = vmatmul.msk.f32.gmra.mxu0 %vm56_vm0, %v42_v8 }
 0x27f   :  { %704 = vmatpush.msrb.mxu2 %v1072_v9 }
 0x2fb   :  { %v220_v49 = vpop.f32.mrf.mxu2  ;;  %v104_v23 = vpop.f32.mrf.mxu0 }
 0x2fc   :  { %v223_v50 = vadd.f32 %v220_v49, %v102_v48  ;;  %v105_v24 = vadd.f32 %v1095_v13, %v104_v23  ;;  %v43_v49 = vld [vmem:[%s1257_s0 + $0x18] sm:$0xff] }
 0x2fd   :  { %801 = vmatmul.msk.f32.gmra.mxu0 %vm56_vm0, %v43_v49 }
 0x2fe   :  { %858 = vtanh.f32 %v223_v50  ;;  %v808_v52 = vmul.f32 -1.442695, %v223_v50 }
 0x300   :  { %860 = vpow2.f32 %v808_v52  ;;  %v812_v52 = vld [vmem:[%s1261_s4 + $0x10] sm:$0xff] }
 0x301   :  { %vm348_vm15 = vcmp.ne.f32.partialorder %v812_v52, 0.0 }
 0x304   :  { %v859_v51 = vpop.eup %858 }
 0x305   :  { %250 = vrot.lane.b32.xlu2 %v859_v51, %s996_s16 }
 0x306   :  { %v861_v53 = vpop.eup %860 }
 0x307   :  { %v227_v54 = vadd.f32 1.0, %v861_v53 }
 0x309   :  { %862 = vrcp.f32 %v227_v54  ;;  %v239_v60 = vand.u32 2147483648, %v227_v54  ;;  %vm233_vm7 = vweird.f32 %v227_v54  ;;  %v237_v61 = vand.u32 2147483647, %v227_v54 }
 0x30b   :  { %v240_v63 = vor.u32 1.1754944e-38, %v239_v60  ;;  %vm238_vm9 = vcmp.eq.f32.partialorder %v237_v61, 8.507059e+37 }
 0x30f   :  { %v863_v55 = vpop.eup %862 }
 0x310   :  { %v229_v56 = vmul.f32 %v863_v55, %v227_v54  ;;  %vm234_vm6 = vweird.f32 %v863_v55 }
 0x311   :  { %vm235_vm8 = vmor %vm233_vm7, %vm234_vm6 }
 0x312   :  { %v230_v57 = vsub.f32 1.0, %v229_v56 }
 0x314   :  { %v231_v58 = vmul.f32 %v863_v55, %v230_v57 }
 0x316   :  { %v232_v59 = vadd.f32 %v863_v55, %v231_v58 }
 0x318   :  { %v236_v62 = vsel %vm235_vm8, %v863_v55, %v232_v59 }
 0x319   :  { %v241_v1 = vsel %vm238_vm9, %v240_v63, %v236_v62 }
 0x31a   :  { %v248_v4 = vmul.f32 %v246_v3, %v241_v1 }
 0x35f   :  { %v251_v0 = vpop.permute.xlu2 %250 }
 0x360   :  { %v253_v2 = vmul.f32 %v251_v0, %v241_v1 }
 0x362   :  { %255 = vrot.lane.b32.xlu1 %v253_v2, %s996_s16 }
 0x37a   :  { %v107_v58 = vpop.f32.mrf.mxu0 }
 0x37b   :  { %v108_v59 = vadd.f32 %v1095_v13, %v107_v58 }
 0x3d4   :  { %v256_v5 = vpop.permute.xlu1 %255 }
 0x3d5   :  { %v258_v10 = vadd.f32 %v256_v5, %v248_v4 }
 0x3d7   :  { %864 = vtanh.f32 %v258_v10  ;;  %277 = vrot.lane.b32.xlu1 %v258_v10, %s997_s2 }
 0x3dd   :  { %v865_v12 = vpop.eup %864 }
 0x3de   :  { %261 = vrot.lane.b32.xlu2 %v865_v12, %s996_s16 }
 0x438   :  { %v262_v16 = vpop.permute.xlu2 %261 }
 0x439   :  { %v264_v17 = vmul.f32 %v262_v16, %v241_v1 }
 0x43b   :  { %269 = vrot.lane.b32.xlu0 %v264_v17, %s998_s19 }
 0x449   :  { %v278_v7 = vpop.permute.xlu1 %277 }
 0x44a   :  { %v280_v18 = vsel %vm267_vm10, %v278_v7, %v1106_v39 }
 0x44b   :  { %326 = vrot.lane.b32.xlu0 %v280_v18, %s996_s16 }
 0x4ad   :  { %v270_v9 = vpop.permute.xlu0 %269 }
 0x4ae   :  { %v272_v19 = vsel %vm267_vm10, %v270_v9, 0.0  ;;  %v275_v20 = vsel %vm267_vm10, %v270_v9, %v1124_v45 }
 0x4af   :  { %274 = vst.msk [vmem:[#allocation5 + $0x8] sm:$0xff] %vm56_vm0, %v272_v19  ;;  %810 = vmatmul.msk.f32.vlgmr.msrb.gmra.mxu3 %vm56_vm0, %v275_v20 }
 0x4bd   :  { %v327_v43 = vpop.permute.xlu0 %326 }
 0x532   :  { %v301_v25 = vpop.f32.mrf.mxu3 }
 0x533   :  { %v304_v26 = vadd.f32 %v301_v25, %v105_v24  ;;  %v815_v25 = vld [vmem:[%s1261_s4 + $0x18] sm:$0xff] }
 0x534   :  { %vm429_vm5 = vcmp.ne.f32.partialorder %v815_v25, 0.0 }
 0x535   :  { %866 = vtanh.f32 %v304_v26  ;;  %v811_v28 = vmul.f32 -1.442695, %v304_v26 }
 0x537   :  { %868 = vpow2.f32 %v811_v28 }
 0x53b   :  { %v867_v27 = vpop.eup %866 }
 0x53c   :  { %331 = vrot.lane.b32.xlu2 %v867_v27, %s996_s16 }
 0x53d   :  { %v869_v29 = vpop.eup %868 }
 0x53e   :  { %v308_v30 = vadd.f32 1.0, %v869_v29 }
 0x540   :  { %870 = vrcp.f32 %v308_v30  ;;  %v320_v36 = vand.u32 2147483648, %v308_v30  ;;  %vm314_vm12 = vweird.f32 %v308_v30  ;;  %v318_v37 = vand.u32 2147483647, %v308_v30 }
 0x542   :  { %v321_v39 = vor.u32 1.1754944e-38, %v320_v36  ;;  %vm319_vm14 = vcmp.eq.f32.partialorder %v318_v37, 8.507059e+37 }
 0x546   :  { %v871_v31 = vpop.eup %870 }
 0x547   :  { %v310_v32 = vmul.f32 %v871_v31, %v308_v30  ;;  %vm315_vm11 = vweird.f32 %v871_v31 }
 0x548   :  { %vm316_vm13 = vmor %vm314_vm12, %vm315_vm11 }
 0x549   :  { %v311_v33 = vsub.f32 1.0, %v310_v32 }
 0x54b   :  { %v312_v34 = vmul.f32 %v871_v31, %v311_v33 }
 0x54d   :  { %v313_v35 = vadd.f32 %v871_v31, %v312_v34 }
 0x54f   :  { %v317_v38 = vsel %vm316_vm13, %v871_v31, %v313_v35  ;;  %v111_v31 = vadd.f32 %v1095_v13, %v1090_v11 }
 0x550   :  { %v322_v41 = vsel %vm319_vm14, %v321_v39, %v317_v38 }
 0x551   :  { %v329_v44 = vmul.f32 %v327_v43, %v322_v41 }
 0x596   :  { %v332_v40 = vpop.permute.xlu2 %331 }
 0x597   :  { %v334_v42 = vmul.f32 %v332_v40, %v322_v41 }
 0x599   :  { %336 = vrot.lane.b32.xlu1 %v334_v42, %s996_s16 }
 0x60b   :  { %v337_v45 = vpop.permute.xlu1 %336 }
 0x60c   :  { %v339_v47 = vadd.f32 %v337_v45, %v329_v44 }
 0x60e   :  { %872 = vtanh.f32 %v339_v47  ;;  %358 = vrot.lane.b32.xlu1 %v339_v47, %s997_s2 }
 0x614   :  { %v873_v48 = vpop.eup %872 }
 0x615   :  { %342 = vrot.lane.b32.xlu2 %v873_v48, %s996_s16 }
 0x66f   :  { %v343_v50 = vpop.permute.xlu2 %342 }
 0x670   :  { %v345_v51 = vmul.f32 %v343_v50, %v322_v41 }
 0x672   :  { %350 = vrot.lane.b32.xlu0 %v345_v51, %s998_s19 }
 0x680   :  { %v359_v53 = vpop.permute.xlu1 %358 }
 0x681   :  { %v361_v54 = vsel %vm348_vm15, %v359_v53, %v280_v18 }
 0x682   :  { %407 = vrot.lane.b32.xlu0 %v361_v54, %s996_s16 }
 0x6e4   :  { %v351_v55 = vpop.permute.xlu0 %350 }
 0x6e5   :  { %v353_v56 = vsel %vm348_vm15, %v351_v55, 0.0  ;;  %v356_v57 = vsel %vm348_vm15, %v351_v55, %v275_v20 }
 0x6e6   :  { %355 = vst.msk [vmem:[#allocation5 + $0x10] sm:$0xff] %vm56_vm0, %v353_v56  ;;  %813 = vmatmul.msk.f32.vlgmr.msra.gmra.mxu1 %vm56_vm0, %v356_v57 }
 0x6f4   :  { %v408_v18 = vpop.permute.xlu0 %407 }
 0x763   :  { %v382_v60 = vpop.f32.mrf.mxu1 }
 0x764   :  { %v385_v61 = vadd.f32 %v382_v60, %v108_v59 }
 0x766   :  { %874 = vtanh.f32 %v385_v61  ;;  %v814_v63 = vmul.f32 -1.442695, %v385_v61 }
 0x768   :  { %876 = vpow2.f32 %v814_v63  ;;  %v114_v63 = vadd.f32 %v1095_v13, %v1134_v46 }
 0x76c   :  { %v875_v62 = vpop.eup %874 }
 0x76d   :  { %412 = vrot.lane.b32.xlu2 %v875_v62, %s996_s16 }
 0x76e   :  { %v877_v0 = vpop.eup %876 }
 0x76f   :  { %v389_v1 = vadd.f32 1.0, %v877_v0 }
 0x771   :  { %878 = vrcp.f32 %v389_v1  ;;  %v401_v12 = vand.u32 2147483648, %v389_v1  ;;  %vm395_vm2 = vweird.f32 %v389_v1  ;;  %v399_v14 = vand.u32 2147483647, %v389_v1 }
 0x773   :  { %v402_v16 = vor.u32 1.1754944e-38, %v401_v12  ;;  %vm400_vm4 = vcmp.eq.f32.partialorder %v399_v14, 8.507059e+37 }
 0x777   :  { %v879_v2 = vpop.eup %878 }
 0x778   :  { %v391_v3 = vmul.f32 %v879_v2, %v389_v1  ;;  %vm396_vm1 = vweird.f32 %v879_v2 }
 0x779   :  { %vm397_vm3 = vmor %vm395_vm2, %vm396_vm1 }
 0x77a   :  { %v392_v4 = vsub.f32 1.0, %v391_v3 }
 0x77c   :  { %v393_v5 = vmul.f32 %v879_v2, %v392_v4 }
 0x77e   :  { %v394_v10 = vadd.f32 %v879_v2, %v393_v5 }
 0x780   :  { %v398_v15 = vsel %vm397_vm3, %v879_v2, %v394_v10 }
 0x781   :  { %v403_v6 = vsel %vm400_vm4, %v402_v16, %v398_v15 }
 0x782   :  { %v410_v8 = vmul.f32 %v408_v18, %v403_v6 }
 0x7c7   :  { %v413_v17 = vpop.permute.xlu2 %412 }
 0x7c8   :  { %v415_v7 = vmul.f32 %v413_v17, %v403_v6 }
 0x7ca   :  { %417 = vrot.lane.b32.xlu1 %v415_v7, %s996_s16 }
 0x83c   :  { %v418_v9 = vpop.permute.xlu1 %417 }
 0x83d   :  { %v420_v19 = vadd.f32 %v418_v9, %v410_v8 }
 0x83f   :  { %880 = vtanh.f32 %v420_v19  ;;  %439 = vrot.lane.b32.xlu1 %v420_v19, %s997_s2 }
 0x845   :  { %v881_v20 = vpop.eup %880 }
 0x846   :  { %423 = vrot.lane.b32.xlu2 %v881_v20, %s996_s16 }
 0x8a0   :  { %v424_v23 = vpop.permute.xlu2 %423 }
 0x8a1   :  { %v426_v24 = vmul.f32 %v424_v23, %v403_v6 }
 0x8a3   :  { %431 = vrot.lane.b32.xlu0 %v426_v24, %s998_s19 }
 0x8b1   :  { %v440_v26 = vpop.permute.xlu1 %439 }
 0x8b2   :  { %v442_v27 = vsel %vm429_vm5, %v440_v26, %v361_v54 }
 0x8b3   :  { %488 = vrot.lane.b32.xlu0 %v442_v27, %s996_s16 }
 0x915   :  { %v432_v28 = vpop.permute.xlu0 %431 }
 0x916   :  { %v434_v29 = vsel %vm429_vm5, %v432_v28, 0.0  ;;  %v437_v30 = vsel %vm429_vm5, %v432_v28, %v356_v57  ;;  %v818_v57 = vld [vmem:[%s1261_s4 + $0x20] sm:$0xff]  ;;  %v821_v28 = vld [vmem:[%s1261_s4 + $0x28] sm:$0xff] }
 0x917   :  { %436 = vst.msk [vmem:[#allocation5 + $0x18] sm:$0xff] %vm56_vm0, %v434_v29  ;;  %816 = vmatmul.msk.f32.vlgmr.msra.gmra.mxu2 %vm56_vm0, %v437_v30  ;;  %vm510_vm10 = vcmp.ne.f32.partialorder %v818_v57, 0.0  ;;  %vm591_vm15 = vcmp.ne.f32.partialorder %v821_v28, 0.0  ;;  %v827_v28 = vld [vmem:[%s1261_s4 + $0x38] sm:$0xff] }
 0x925   :  { %v489_v50 = vpop.permute.xlu0 %488 }
 0x99a   :  { %v463_v32 = vpop.f32.mrf.mxu2 }
 0x99b   :  { %v466_v33 = vadd.f32 %v463_v32, %v111_v31 }
 0x99d   :  { %882 = vtanh.f32 %v466_v33  ;;  %v817_v35 = vmul.f32 -1.442695, %v466_v33 }
 0x99f   :  { %884 = vpow2.f32 %v817_v35 }
 0x9a3   :  { %v883_v34 = vpop.eup %882 }
 0x9a4   :  { %493 = vrot.lane.b32.xlu2 %v883_v34, %s996_s16  ;;  %v117_v34 = vadd.f32 %v1095_v13, %v1166_v21 }
 0x9a5   :  { %v885_v36 = vpop.eup %884 }
 0x9a6   :  { %v470_v37 = vadd.f32 1.0, %v885_v36 }
 0x9a8   :  { %886 = vrcp.f32 %v470_v37  ;;  %v482_v43 = vand.u32 2147483648, %v470_v37  ;;  %vm476_vm7 = vweird.f32 %v470_v37  ;;  %v480_v11 = vand.u32 2147483647, %v470_v37 }
 0x9aa   :  { %v483_v45 = vor.u32 1.1754944e-38, %v482_v43  ;;  %vm481_vm9 = vcmp.eq.f32.partialorder %v480_v11, 8.507059e+37 }
 0x9ae   :  { %v887_v38 = vpop.eup %886 }
 0x9af   :  { %v472_v39 = vmul.f32 %v887_v38, %v470_v37  ;;  %vm477_vm6 = vweird.f32 %v887_v38 }
 0x9b0   :  { %vm478_vm8 = vmor %vm476_vm7, %vm477_vm6 }
 0x9b1   :  { %v473_v40 = vsub.f32 1.0, %v472_v39 }
 0x9b3   :  { %v474_v41 = vmul.f32 %v887_v38, %v473_v40 }
 0x9b5   :  { %v475_v42 = vadd.f32 %v887_v38, %v474_v41 }
 0x9b7   :  { %v479_v44 = vsel %vm478_vm8, %v887_v38, %v475_v42 }
 0x9b8   :  { %v484_v48 = vsel %vm481_vm9, %v483_v45, %v479_v44 }
 0x9b9   :  { %v491_v51 = vmul.f32 %v489_v50, %v484_v48 }
 0x9fe   :  { %v494_v47 = vpop.permute.xlu2 %493 }
 0x9ff   :  { %v496_v49 = vmul.f32 %v494_v47, %v484_v48 }
 0xa01   :  { %498 = vrot.lane.b32.xlu1 %v496_v49, %s996_s16 }
 0xa73   :  { %v499_v52 = vpop.permute.xlu1 %498 }
 0xa74   :  { %v501_v53 = vadd.f32 %v499_v52, %v491_v51 }
 0xa76   :  { %888 = vtanh.f32 %v501_v53  ;;  %520 = vrot.lane.b32.xlu1 %v501_v53, %s997_s2 }
 0xa7c   :  { %v889_v54 = vpop.eup %888 }
 0xa7d   :  { %504 = vrot.lane.b32.xlu2 %v889_v54, %s996_s16 }
 0xad7   :  { %v505_v55 = vpop.permute.xlu2 %504 }
 0xad8   :  { %v507_v56 = vmul.f32 %v505_v55, %v484_v48 }
 0xada   :  { %512 = vrot.lane.b32.xlu0 %v507_v56, %s998_s19 }
 0xae8   :  { %v521_v58 = vpop.permute.xlu1 %520 }
 0xae9   :  { %v523_v59 = vsel %vm510_vm10, %v521_v58, %v442_v27 }
 0xaea   :  { %569 = vrot.lane.b32.xlu0 %v523_v59, %s996_s16 }
 0xb4c   :  { %v513_v60 = vpop.permute.xlu0 %512 }
 0xb4d   :  { %v515_v61 = vsel %vm510_vm10, %v513_v60, 0.0  ;;  %v518_v62 = vsel %vm510_vm10, %v513_v60, %v437_v30  ;;  %vm753_vm10 = vcmp.ne.f32.partialorder %v827_v28, 0.0 }
 0xb4e   :  { %517 = vst.msk [vmem:[#allocation5 + $0x20] sm:$0xff] %vm56_vm0, %v515_v61  ;;  %819 = vmatmul.msk.f32.vlgmr.msra.gmra.mxu3 %vm56_vm0, %v518_v62 }
 0xb5c   :  { %v570_v19 = vpop.permute.xlu0 %569 }
 0xbd1   :  { %v544_v0 = vpop.f32.mrf.mxu3 }
 0xbd2   :  { %v547_v1 = vadd.f32 %v544_v0, %v114_v63 }
 0xbd4   :  { %890 = vtanh.f32 %v547_v1  ;;  %v820_v3 = vmul.f32 -1.442695, %v547_v1  ;;  %v120_v1 = vadd.f32 %v1095_v13, %v1168_v22 }
 0xbd6   :  { %892 = vpow2.f32 %v820_v3 }
 0xbda   :  { %v891_v2 = vpop.eup %890 }
 0xbdb   :  { %574 = vrot.lane.b32.xlu2 %v891_v2, %s996_s16 }
 0xbdc   :  { %v893_v4 = vpop.eup %892 }
 0xbdd   :  { %v551_v5 = vadd.f32 1.0, %v893_v4 }
 0xbdf   :  { %894 = vrcp.f32 %v551_v5  ;;  %v563_v17 = vand.u32 2147483648, %v551_v5  ;;  %vm557_vm12 = vweird.f32 %v551_v5  ;;  %v561_v46 = vand.u32 2147483647, %v551_v5 }
 0xbe1   :  { %v564_v7 = vor.u32 1.1754944e-38, %v563_v17  ;;  %vm562_vm14 = vcmp.eq.f32.partialorder %v561_v46, 8.507059e+37 }
 0xbe5   :  { %v895_v10 = vpop.eup %894 }
 0xbe6   :  { %v553_v12 = vmul.f32 %v895_v10, %v551_v5  ;;  %vm558_vm11 = vweird.f32 %v895_v10 }
 0xbe7   :  { %vm559_vm13 = vmor %vm557_vm12, %vm558_vm11 }
 0xbe8   :  { %v554_v14 = vsub.f32 1.0, %v553_v12 }
 0xbea   :  { %v555_v15 = vmul.f32 %v895_v10, %v554_v14 }
 0xbec   :  { %v556_v16 = vadd.f32 %v895_v10, %v555_v15 }
 0xbee   :  { %v560_v6 = vsel %vm559_vm13, %v895_v10, %v556_v16 }
 0xbef   :  { %v565_v8 = vsel %vm562_vm14, %v564_v7, %v560_v6 }
 0xbf0   :  { %v572_v20 = vmul.f32 %v570_v19, %v565_v8 }
 0xc35   :  { %v575_v18 = vpop.permute.xlu2 %574 }
 0xc36   :  { %v577_v9 = vmul.f32 %v575_v18, %v565_v8 }
 0xc38   :  { %579 = vrot.lane.b32.xlu1 %v577_v9, %s996_s16 }
 0xcaa   :  { %v580_v23 = vpop.permute.xlu1 %579 }
 0xcab   :  { %v582_v24 = vadd.f32 %v580_v23, %v572_v20 }
 0xcad   :  { %896 = vtanh.f32 %v582_v24  ;;  %601 = vrot.lane.b32.xlu1 %v582_v24, %s997_s2 }
 0xcb3   :  { %v897_v25 = vpop.eup %896 }
 0xcb4   :  { %585 = vrot.lane.b32.xlu2 %v897_v25, %s996_s16 }
 0xd0e   :  { %v586_v26 = vpop.permute.xlu2 %585 }
 0xd0f   :  { %v588_v27 = vmul.f32 %v586_v26, %v565_v8 }
 0xd11   :  { %593 = vrot.lane.b32.xlu0 %v588_v27, %s998_s19 }
 0xd1f   :  { %v602_v29 = vpop.permute.xlu1 %601 }
 0xd20   :  { %v604_v30 = vsel %vm591_vm15, %v602_v29, %v523_v59  ;;  %v824_v59 = vld [vmem:[%s1261_s4 + $0x30] sm:$0xff] }
 0xd21   :  { %650 = vrot.lane.b32.xlu0 %v604_v30, %s996_s16  ;;  %vm672_vm5 = vcmp.ne.f32.partialorder %v824_v59, 0.0 }
 0xd83   :  { %v594_v31 = vpop.permute.xlu0 %593 }
 0xd84   :  { %v596_v32 = vsel %vm591_vm15, %v594_v31, 0.0  ;;  %v599_v33 = vsel %vm591_vm15, %v594_v31, %v518_v62 }
 0xd85   :  { %598 = vst.msk [vmem:[#allocation5 + $0x28] sm:$0xff] %vm56_vm0, %v596_v32  ;;  %822 = vmatmul.msk.f32.vlgmr.msrb.gmra.mxu1 %vm56_vm0, %v599_v33 }
 0xd93   :  { %v651_v52 = vpop.permute.xlu0 %650 }
 0xe02   :  { %v625_v35 = vpop.f32.mrf.mxu1 }
 0xe03   :  { %v628_v36 = vadd.f32 %v625_v35, %v117_v34 }
 0xe05   :  { %898 = vtanh.f32 %v628_v36  ;;  %v823_v38 = vmul.f32 -1.442695, %v628_v36 }
 0xe07   :  { %900 = vpow2.f32 %v823_v38 }
 0xe0b   :  { %v899_v37 = vpop.eup %898 }
 0xe0c   :  { %655 = vrot.lane.b32.xlu2 %v899_v37, %s996_s16 }
 0xe0d   :  { %v901_v39 = vpop.eup %900 }
 0xe0e   :  { %v632_v40 = vadd.f32 1.0, %v901_v39 }
 0xe10   :  { %902 = vrcp.f32 %v632_v40  ;;  %v644_v45 = vand.u32 2147483648, %v632_v40  ;;  %vm638_vm2 = vweird.f32 %v632_v40  ;;  %v642_v21 = vand.u32 2147483647, %v632_v40 }
 0xe12   :  { %v645_v48 = vor.u32 1.1754944e-38, %v644_v45  ;;  %vm643_vm4 = vcmp.eq.f32.partialorder %v642_v21, 8.507059e+37 }
 0xe16   :  { %v903_v41 = vpop.eup %902 }
 0xe17   :  { %v634_v42 = vmul.f32 %v903_v41, %v632_v40  ;;  %vm639_vm1 = vweird.f32 %v903_v41 }
 0xe18   :  { %vm640_vm3 = vmor %vm638_vm2, %vm639_vm1 }
 0xe19   :  { %v635_v43 = vsub.f32 1.0, %v634_v42 }
 0xe1b   :  { %v636_v11 = vmul.f32 %v903_v41, %v635_v43 }
 0xe1d   :  { %v637_v44 = vadd.f32 %v903_v41, %v636_v11 }
 0xe1f   :  { %v641_v47 = vsel %vm640_vm3, %v903_v41, %v637_v44 }
 0xe20   :  { %v646_v50 = vsel %vm643_vm4, %v645_v48, %v641_v47 }
 0xe21   :  { %v653_v53 = vmul.f32 %v651_v52, %v646_v50 }
 0xe66   :  { %v656_v49 = vpop.permute.xlu2 %655 }
 0xe67   :  { %v658_v51 = vmul.f32 %v656_v49, %v646_v50 }
 0xe69   :  { %660 = vrot.lane.b32.xlu1 %v658_v51, %s996_s16 }
 0xedb   :  { %v661_v54 = vpop.permute.xlu1 %660 }
 0xedc   :  { %v663_v55 = vadd.f32 %v661_v54, %v653_v53 }
 0xede   :  { %904 = vtanh.f32 %v663_v55  ;;  %682 = vrot.lane.b32.xlu1 %v663_v55, %s997_s2 }
 0xee4   :  { %v905_v56 = vpop.eup %904 }
 0xee5   :  { %666 = vrot.lane.b32.xlu2 %v905_v56, %s996_s16 }
 0xf3f   :  { %v667_v57 = vpop.permute.xlu2 %666 }
 0xf40   :  { %v669_v58 = vmul.f32 %v667_v57, %v646_v50 }
 0xf42   :  { %674 = vrot.lane.b32.xlu0 %v669_v58, %s998_s19 }
 0xf50   :  { %v683_v60 = vpop.permute.xlu1 %682 }
 0xf51   :  { %v685_v61 = vsel %vm672_vm5, %v683_v60, %v604_v30 }
 0xf52   :  { %731 = vrot.lane.b32.xlu0 %v685_v61, %s996_s16 }
 0xfb4   :  { %v675_v62 = vpop.permute.xlu0 %674 }
 0xfb5   :  { %v677_v63 = vsel %vm672_vm5, %v675_v62, 0.0  ;;  %v680_v0 = vsel %vm672_vm5, %v675_v62, %v599_v33 }
 0xfb6   :  { %679 = vst.msk [vmem:[#allocation5 + $0x30] sm:$0xff] %vm56_vm0, %v677_v63  ;;  %825 = vmatmul.msk.f32.vlgmr.msrb.gmra.mxu2 %vm56_vm0, %v680_v0 }
 0xfc4   :  { %v732_v19 = vpop.permute.xlu0 %731 }
0x1039   :  { %v706_v2 = vpop.f32.mrf.mxu2 }
0x103a   :  { %v709_v3 = vadd.f32 %v706_v2, %v120_v1 }
0x103c   :  { %906 = vtanh.f32 %v709_v3  ;;  %v826_v5 = vmul.f32 -1.442695, %v709_v3 }
0x103e   :  { %908 = vpow2.f32 %v826_v5 }
0x1042   :  { %v907_v4 = vpop.eup %906 }
0x1043   :  { %736 = vrot.lane.b32.xlu2 %v907_v4, %s996_s16 }
0x1044   :  { %v909_v10 = vpop.eup %908 }
0x1045   :  { %v713_v12 = vadd.f32 1.0, %v909_v10 }
0x1047   :  { %910 = vrcp.f32 %v713_v12  ;;  %v725_v6 = vand.u32 2147483648, %v713_v12  ;;  %vm719_vm7 = vweird.f32 %v713_v12  ;;  %v723_v13 = vand.u32 2147483647, %v713_v12 }
0x1049   :  { %v726_v7 = vor.u32 1.1754944e-38, %v725_v6  ;;  %vm724_vm9 = vcmp.eq.f32.partialorder %v723_v13, 8.507059e+37 }
0x104d   :  { %v911_v14 = vpop.eup %910 }
0x104e   :  { %v715_v15 = vmul.f32 %v911_v14, %v713_v12  ;;  %vm720_vm6 = vweird.f32 %v911_v14 }
0x104f   :  { %vm721_vm8 = vmor %vm719_vm7, %vm720_vm6 }
0x1050   :  { %v716_v16 = vsub.f32 1.0, %v715_v15 }
0x1052   :  { %v717_v17 = vmul.f32 %v911_v14, %v716_v16 }
0x1054   :  { %v718_v46 = vadd.f32 %v911_v14, %v717_v17 }
0x1056   :  { %v722_v22 = vsel %vm721_vm8, %v911_v14, %v718_v46 }
0x1057   :  { %v727_v8 = vsel %vm724_vm9, %v726_v7, %v722_v22 }
0x1058   :  { %v734_v20 = vmul.f32 %v732_v19, %v727_v8 }
0x109d   :  { %v737_v18 = vpop.permute.xlu2 %736 }
0x109e   :  { %v739_v9 = vmul.f32 %v737_v18, %v727_v8 }
0x10a0   :  { %741 = vrot.lane.b32.xlu1 %v739_v9, %s996_s16 }
0x1112   :  { %v742_v23 = vpop.permute.xlu1 %741 }
0x1113   :  { %v744_v24 = vadd.f32 %v742_v23, %v734_v20 }
0x1115   :  { %912 = vtanh.f32 %v744_v24 }
0x111b   :  { %v913_v25 = vpop.eup %912 }
0x111c   :  { %747 = vrot.lane.b32.xlu2 %v913_v25, %s996_s16  ;;  %s783_s16 = sshll.u32 %s1263_s6, 4  ;;  %s784_s16 = int_to_ptr.hbm [resolvable:$true] %s783_s16 }
0x1176   :  { %v748_v26 = vpop.permute.xlu2 %747 }
0x1177   :  { %v750_v27 = vmul.f32 %v748_v26, %v727_v8 }
0x1179   :  { %755 = vrot.lane.b32.xlu0 %v750_v27, %s998_s19 }
0x11eb   :  { %v756_v29 = vpop.permute.xlu0 %755 }
0x11ec   :  { %v758_v30 = vsel %vm753_vm10, %v756_v29, 0.0  ;;  %v761_v31 = vsel %vm753_vm10, %v756_v29, %v680_v0 }
0x11ed   :  { %760 = vst.msk [vmem:[#allocation5 + $0x38] sm:$0xff] %vm56_vm0, %v758_v30 }
0x11ee   :  { %762 = vst.msk [vmem:[#allocation6] sm:$0xff] %vm56_vm0, %v761_v31  ;;  %775 = dma.vmem_to_hbm [thread:$0]  %s768_s23, 1024, %s770_s28, [#allocation4], %s993_s26, %s993_s26, %s994_s27  }
0x11ef   :  { %786 = dma.vmem_to_hbm [thread:$0]  %s782_s30, 128, %s784_s16, [#allocation7]  }
0x11f0   :  { %988 = dma.done.wait [#allocation4], 1024  }
0x11f1   :  { %989 = vsyncadd [#allocation4], 4294966272 }
0x11f2   :  { %990 = dma.done.wait [#allocation7], 128  }
0x11f3   :  { %991 = vsyncadd [#allocation7], 4294967168 }
0x11f4   :  { %795 = vsyncpa [#allocation3], 1 }
0x11f5   :  { %796 = vsyncpa [#allocation4], 1 }
0x11f6   :  { %797 = vsyncpa [#allocation7], 1 }

</bundles_post_ra>
